<compile_context>
chip_gen: v7x
topology: tpu7x:2x2x1
jax: 0.10.0
libtpu: 0.0.40
codegen_flags: <defaults>
</compile_context>

<pallas_src>
import jax
import jax.numpy as jnp
from jax.experimental import pallas as pl
from jax.experimental.pallas import tpu as pltpu


def _ffn_kernel(x_ref, w1_ref, b1_ref, w2_ref, b2_ref, o_ref):
    # y = tanh(x @ W1 + b1) @ W2 + b2, f32 accumulation throughout.
    x = x_ref[...]
    h = jnp.tanh(
        jnp.dot(x, w1_ref[...], preferred_element_type=jnp.float32) + b1_ref[...]
    )
    y = jnp.dot(h, w2_ref[...], preferred_element_type=jnp.float32) + b2_ref[...]
    o_ref[...] = y.astype(o_ref.dtype)


_SMALL_BATCH_THRESHOLD = 1024  # below this a grid is pure launch/pipeline overhead
_TILE_B = 256                  # multiple of 8 (f32 sublane); tiny vs any VMEM budget


def _omega_small(pars, w1, b1, w2, b2):
    """Single-shot path: no grid, no pipelining; everything lives in VMEM."""
    B, _ = pars.shape
    D_out = w2.shape[1]
    vmem = pl.BlockSpec(memory_space=pltpu.MemorySpace.VMEM)
    return pl.pallas_call(
        _ffn_kernel,
        out_shape=jax.ShapeDtypeStruct((B, D_out), pars.dtype),
        in_specs=[vmem] * 5,
        out_specs=vmem,
    )(pars, w1, b1, w2, b2)


def _omega_tiled(pars, w1, b1, w2, b2):
    """Large-batch path: grid over B only, weights/biases resident in VMEM."""
    B, D_in = pars.shape
    D_hid = w1.shape[1]
    D_out = w2.shape[1]

    n_tiles = pl.cdiv(B, _TILE_B)
    B_pad = n_tiles * _TILE_B
    x = pars if B_pad == B else jnp.pad(pars, ((0, B_pad - B), (0, 0)))

    out = pl.pallas_call(
        _ffn_kernel,
        out_shape=jax.ShapeDtypeStruct((B_pad, D_out), pars.dtype),
        grid=(n_tiles,),
        in_specs=[
            pl.BlockSpec((_TILE_B, D_in), lambda i: (i, 0)),
            # Constant index_maps: weights/biases DMA'd once, reused each step.
            pl.BlockSpec((D_in, D_hid), lambda i: (0, 0)),
            pl.BlockSpec((1, D_hid), lambda i: (0, 0)),
            pl.BlockSpec((D_hid, D_out), lambda i: (0, 0)),
            pl.BlockSpec((1, D_out), lambda i: (0, 0)),
        ],
        out_specs=pl.BlockSpec((_TILE_B, D_out), lambda i: (i, 0)),
        compiler_params=pltpu.CompilerParams(
            dimension_semantics=("parallel",)),
    )(x, w1, b1, w2, b2)
    return out[:B] if B_pad != B else out


def omega_forward(grids, pars, w1, b1, w2, b2):
    """Pallas implementation of Omega.forward(grids, pars) = ffn(pars).

    `grids` is accepted for signature fidelity but (exactly like the PyTorch
    module) does not participate in the computation.
    """
    del grids  # unused, per Omega.forward semantics
    if pars.shape[0] < _SMALL_BATCH_THRESHOLD:
        return _omega_small(pars, w1, b1, w2, b2)
    return _omega_tiled(pars, w1, b1, w2, b2)


if __name__ == "__main__":
    key = jax.random.PRNGKey(0)
    k_grids, k_pars, k_w1, k_b1, k_w2, k_b2, k_big = jax.random.split(key, 7)

    # Small shapes consistent with the module's forward:
    #   grids: NCHW tensor (unused), pars: (batch, feature) input to the ffn.
    B, D_in, D_hid, D_out = 8, 16, 32, 8
    grids = jax.random.normal(k_grids, (2, 4, 16, 16), dtype=jnp.float32)
    pars = jax.random.normal(k_pars, (B, D_in), dtype=jnp.float32)

    # Deterministic ffn parameters (synthetic, not loaded from checkpoint).
    w1 = jax.random.normal(k_w1, (D_in, D_hid), dtype=jnp.float32) * 0.1
    b1 = jax.random.normal(k_b1, (1, D_hid), dtype=jnp.float32) * 0.1
    w2 = jax.random.normal(k_w2, (D_hid, D_out), dtype=jnp.float32) * 0.1
    b2 = jax.random.normal(k_b2, (1, D_out), dtype=jnp.float32) * 0.1

    def ref_ffn(x):
        return jnp.tanh(x @ w1 + b1) @ w2 + b2

    # 1) Small-batch (module's real regime): grid-free path.
    out = jax.block_until_ready(omega_forward(grids, pars, w1, b1, w2, b2))
    assert out.shape == (B, D_out)
    assert jnp.allclose(out, ref_ffn(pars), atol=1e-5, rtol=1e-5)

    # 2) Batched path: grid over B, weights resident in VMEM, "parallel" axis.
    B_big = 2048
    pars_big = jax.random.normal(k_big, (B_big, D_in), dtype=jnp.float32)
    out_big = jax.block_until_ready(
        omega_forward(grids, pars_big, w1, b1, w2, b2))
    assert out_big.shape == (B_big, D_out)
    assert jnp.allclose(out_big, ref_ffn(pars_big), atol=1e-5, rtol=1e-5)

    print("KERNEL_OK")
</pallas_src>

<mosaic_0001>
module attributes {stable_mosaic.version = 11 : i64} {
  func.func @_ffn_kernel(%arg0: memref<8x16xf32, #tpu.memory_space<vmem>>, %arg1: memref<16x32xf32, #tpu.memory_space<vmem>>, %arg2: memref<1x32xf32, #tpu.memory_space<vmem>>, %arg3: memref<32x8xf32, #tpu.memory_space<vmem>>, %arg4: memref<1x8xf32, #tpu.memory_space<vmem>>, %arg5: memref<8x8xf32, #tpu.memory_space<vmem>>) attributes {dimension_semantics = [], scalar_prefetch = 0 : i64, scratch_operands = 0 : i64, tpu.core_type = #tpu.core_type<tc>} {
    %c0 = arith.constant 0 : index
    %c0_0 = arith.constant 0 : index
    %0 = vector.load %arg0[%c0, %c0_0] : memref<8x16xf32, #tpu.memory_space<vmem>>, vector<8x16xf32>
    %c0_1 = arith.constant 0 : index
    %c0_2 = arith.constant 0 : index
    %1 = vector.load %arg1[%c0_1, %c0_2] : memref<16x32xf32, #tpu.memory_space<vmem>>, vector<16x32xf32>
    %cst = arith.constant dense<0.000000e+00> : vector<8x32xf32>
    %2 = tpu.matmul %0, %1, %cst {dimension_numbers = #tpu.dot_dimension_numbers<[1], [0], [0], [1], [0, 0, 1, 1], [], []>} : vector<8x16xf32>, vector<16x32xf32>, vector<8x32xf32> -> vector<8x32xf32>
    %c0_3 = arith.constant 0 : index
    %c0_4 = arith.constant 0 : index
    %3 = vector.load %arg2[%c0_3, %c0_4] : memref<1x32xf32, #tpu.memory_space<vmem>>, vector<1x32xf32>
    %4 = vector.broadcast %3 : vector<1x32xf32> to vector<8x32xf32>
    %5 = arith.addf %2, %4 : vector<8x32xf32>
    %6 = math.tanh %5 : vector<8x32xf32>
    %c0_5 = arith.constant 0 : index
    %c0_6 = arith.constant 0 : index
    %7 = vector.load %arg3[%c0_5, %c0_6] : memref<32x8xf32, #tpu.memory_space<vmem>>, vector<32x8xf32>
    %cst_7 = arith.constant dense<0.000000e+00> : vector<8x8xf32>
    %8 = tpu.matmul %6, %7, %cst_7 {dimension_numbers = #tpu.dot_dimension_numbers<[1], [0], [0], [1], [0, 0, 1, 1], [], []>} : vector<8x32xf32>, vector<32x8xf32>, vector<8x8xf32> -> vector<8x8xf32>
    %c0_8 = arith.constant 0 : index
    %c0_9 = arith.constant 0 : index
    %9 = vector.load %arg4[%c0_8, %c0_9] : memref<1x8xf32, #tpu.memory_space<vmem>>, vector<1x8xf32>
    %10 = vector.broadcast %9 : vector<1x8xf32> to vector<8x8xf32>
    %11 = arith.addf %8, %10 : vector<8x8xf32>
    %c0_10 = arith.constant 0 : index
    %c0_11 = arith.constant 0 : index
    %12 = vector.load %arg5[%c0_10, %c0_11] : memref<8x8xf32, #tpu.memory_space<vmem>>, vector<8x8xf32>
    tpu.vector_store %arg5[%c0_10, %c0_11], %11 {strides = array<i32>} : memref<8x8xf32, #tpu.memory_space<vmem>>, vector<8x8xf32>,
    return
  }
}

</mosaic_0001>

<bundles_post_ra>
// kernel: tpu_custom_call.1
= control target key start
LH: loop header
LB: loop body
LE: loop exit
PB: predicated region body
PF: predicated region fallthrough
CT: control target
= control target key end

     0   :  { %v276_v2 = vmov 0.0|0.0   ;;  %vm277_vm0 = vmmov 0   ;;  %v278_v4 = vmov 0.0   ;;  %s349_s0 = inlined_call_operand.vmem [shape: f32[8,16], index: 0, kind: input, shape index: {}]   ;;  %s350_s1 = inlined_call_operand.vmem [shape: f32[16,32], index: 1, kind: input, shape index: {}]   ;;  %s351_s2 = inlined_call_operand.vmem [shape: f32[1,32], index: 2, kind: input, shape index: {}]   ;;  %s352_s3 = inlined_call_operand.vmem [shape: f32[32,8], index: 3, kind: input, shape index: {}]   ;;  %s353_s4 = inlined_call_operand.vmem [shape: f32[1,8], index: 4, kind: input, shape index: {}]   ;;  %s354_s5 = inlined_call_operand.hbm [shape: f32[8,8], index: 5, kind: output, shape index: {}]  }
   0x1   :  { %v22_v0 = vld [vmem:[%s350_s1] sm:$0xff]  ;;  %v23_v1 = vld [vmem:[%s350_s1 + $0x8] sm:$0xff]  ;;  %237 = vmatprep.subr.bf16.mxu0 %v276_v2  ;;  %223 = vmatprep.mubr.msk.f32.mxu0 %vm277_vm0, %v278_v4 }
   0x2   :  { %v238_v3 = vpack.c.bf16 %v23_v1, %v22_v0 }
   0x3   :  { %10 = vsyncpa [#allocation3], 0  ;;  %240 = vmatprep.subr.bf16.mxu1 %v276_v2  ;;  %234 = vmatprep.mubr.msk.f32.mxu1 %vm277_vm0, %v278_v4  ;;  %v21_v5 = vld [vmem:[%s349_s0] sm:$0xff]  ;;  %vm31_vm1 = vcmask 130048   ;;  %v107_v7 = vld [vmem:[%s352_s3 + $0x8] sm:$0xff]  ;;  %vm117_vm2 = vcmask 261120  }
   0x4   :  { %239 = vmatpush3.bf16.msra.mxu0 %v238_v3  ;;  %v106_v6 = vld [vmem:[%s352_s3] sm:$0xff]  ;;  %v108_v8 = vld [vmem:[%s352_s3 + $0x10] sm:$0xff]  ;;  %v109_v10 = vld [vmem:[%s352_s3 + $0x18] sm:$0xff]  ;;  %s279_s3 = smov [#allocation2]   ;;  %vm191_vm3 = vcmask 64512  }
   0x5   :  { %v241_v9 = vpack.c.bf16 %v107_v7, %v106_v6  ;;  %v244_v11 = vpack.c.bf16 %v109_v10, %v108_v8  ;;  %v207_v12 = vld [vmem:[%s351_s2] ss:$0 sm:$0xff]  ;;  %s199_s9 = sshll.u32 %s279_s3, 4  ;;  %s200_s9 = int_to_ptr.vmem [resolvable:$true] %s199_s9 }
   0x6   :  { %v209_v17 = vld [vmem:[%s353_s4] ss:$0 sm:$0xff]  ;;  %s252_s2 = scalar_lea.vmem %s200_s9, 128  ;;  %p257_p1 = scmp.lt.s32.totalorder %s200_s9, %s200_s9 }
   0x7   :  { %224 = vmatmul.mubr.msk.f32.vlgmr.msra.gmra.mrb[0].mxu0 %vm31_vm1, %v21_v5  ;;  %242 = vmatpush3.bf16.msra.mxu1 %v241_v9  ;;  %p253_p0 = scmp.ne.s32.totalorder %s200_s9, %s252_s2  ;;  %p258_p2 = scmp.lt.s32.totalorder %s252_s2, %s252_s2 }
   0x8   :  { %243 = vmatprep.subr.bf16.mxu1 %v276_v2 }
   0x9   :  { %p259_p3 = por %p258_p2, %p257_p1 }
   0xb   :  { %245 = vmatpush3.bf16.msra.mxu1 %v244_v11  ;;  %p260_p4 = pnand %p259_p3, %p253_p0 }
  0xda   :  { %v101_v13 = vpop.f32.mrb[0].mxu0 }
  0xdb   :  { %v102_v14 = vadd.f32 %v207_v12, %v101_v13  ;;  %v225_v15 = vpop.f32.mrb[1].mxu0 }
  0xdd   :  { %250 = vtanh.f32 %v102_v14 }
  0xe7   :  { %v251_v16 = vpop.eup %250 }
  0xe8   :  { %235 = vmatmul.mubr.msk.f32.vlgmr.msra.gmra.mrb[0].mxu1 %vm117_vm2, %v251_v16 }
 0x1bb   :  { %v187_v18 = vpop.f32.mrb[0].mxu1 }
 0x1bc   :  { %v188_v19 = vadd.f32 %v209_v17, %v187_v18  ;;  %v236_v20 = vpop.f32.mrb[1].mxu1 }
 0x1be   :  { %192 = vst.msk [vmem:[#allocation2] sm:$0xff] %vm191_vm3, %v188_v19 }
 0x1bf   :  { %263 = shalt.err (!%p260_p4)
}
 0x1c0   :  { %s264_s12 = scalar_lea.hbm %s354_s5, 128 }
 0x1c1   :  { %p265_p5 = scmp.ne.s32.totalorder %s354_s5, %s264_s12  ;;  %p268_p6 = scmp.lt.u32.totalorder %s264_s12, %s354_s5 }
 0x1c3   :  { %p270_p7 = pnand %p268_p6, %p265_p5 }
 0x1c5   :  { %273 = shalt.err (!%p270_p7)
}
 0x1c6   :  { %202 = dma.vmem_to_hbm [thread:$0]  %s200_s9, 128, %s354_s5, [#allocation3]  }
 0x1c7   :  { %274 = dma.done.wait [#allocation3], 128  }
 0x1c8   :  { %275 = vsyncadd [#allocation3], 4294967168 }
 0x1c9   :  { %206 = vsyncpa [#allocation3], 1 }

</bundles_post_ra>
